<compile_context>
chip_gen: v5e
topology: v5e:2x2
jax: 0.10.0
libtpu: 0.0.40
codegen_flags: <defaults>
</compile_context>

<pallas_src>
import functools

import jax
import jax.numpy as jnp
from jax.experimental import pallas as pl
from jax.experimental.pallas import tpu as pltpu


def _round_up(n, m):
    return ((n + m - 1) // m) * m


def _vmem_capacity_bytes():
    """Physical VMEM per TensorCore; conservative fallback if the query fails."""
    try:
        return int(pltpu.get_tpu_info().vmem_capacity_bytes)
    except Exception:
        return 64 << 20  # v7x-sized (smallest current generation)


def _num_tensorcores():
    """TensorCores per chip (megacore): 2 on v4/v5p/v7x, 1 on v5e/v6e."""
    try:
        kind = jax.devices()[0].device_kind.lower()
    except Exception:
        return 1
    return 2 if any(t in kind for t in ("v7", "v4", "v5p")) else 1


def _sublane(*dtypes):
    """Rows per vreg for the narrowest dtype involved (8 f32 / 16 bf16 / 32 i8)."""
    itm = min(jnp.dtype(d).itemsize for d in dtypes)
    return max(8, 32 // itm)


def _pick_tile_b(B, sublane, allow_core_split):
    if B >= 1024:
        return 512                    # MXU-aligned, large tiles ≈ HBM roofline
    if B >= 512:
        return 256                    # multiple of 256 (v6e/v7x MXU rows)
    if allow_core_split:
        return _round_up(pl.cdiv(B, 2), sublane)   # one tile per TensorCore
    return max(sublane, _round_up(B, sublane))     # single grid step


def _pick_tile_n(Dp, itm_w, vmem_cap):
    """Feature (output-column) tile. tile_n == Dp keeps the weight resident."""
    w_bytes = Dp * 2 * Dp * itm_w
    resident_budget = min(24 << 20, int(0.40 * vmem_cap))
    if w_bytes <= resident_budget:
        return Dp
    blk_budget = min(12 << 20, int(0.20 * vmem_cap))
    for cand in range(Dp, 127, -128):
        if Dp % cand == 0 and Dp * 2 * cand * itm_w <= blk_budget:
            return cand
    return 128


def highway_kernel(x_ref, w_ref, b_ref, o_ref, *, precision=None):
    """One (batch tile, feature tile) step.

    x_ref : (tile_b, Dp)      input tile (streamed dtype)
    w_ref : (Dp, 2*tile_n)    fused weight block [W_H^T cols | W_T^T cols]
    b_ref : (1, 2*tile_n)     fused bias block   [b_H | b_T], f32
    o_ref : (tile_b, tile_n)  output tile
    """
    tn = o_ref.shape[-1]
    x = x_ref[...]

    # One wide MXU matmul covering both branches of this column tile (f32 acc).
    acc = jnp.dot(x.astype(w_ref.dtype), w_ref[...],
                  preferred_element_type=jnp.float32, precision=precision)
    acc = acc + b_ref[...]

    h = jnp.maximum(acc[:, :tn], 0.0)                    # relu(H(x))
    # sigmoid(t) == 0.5*(tanh(t/2)+1): one EUP transcendental instead of two.
    gate = 0.5 * (jnp.tanh(0.5 * acc[:, tn:]) + 1.0)

    if x_ref.shape[-1] == tn:                            # single feature tile
        x_res = x.astype(jnp.float32)
    else:                                                # residual cols of this tile
        start = pl.multiple_of(pl.program_id(1) * tn, 128)
        x_res = x_ref[:, pl.ds(start, tn)].astype(jnp.float32)

    # y = h*gate + x*(1-gate) == x + gate*(h - x)  (one fewer VPU op)
    o_ref[...] = (x_res + gate * (h - x_res)).astype(o_ref.dtype)


def highway_ref(x, w_h, b_h, w_t, b_t):
    """Pure-JAX reference matching the PyTorch forward."""
    gate = jax.nn.sigmoid(x @ w_t.T + b_t)
    h = jnp.maximum(x @ w_h.T + b_h, 0.0)
    return h * gate + x * (1.0 - gate)


def highway_forward(x, w_h, b_h, w_t, b_t, *,
                    tile_b=None, tile_n=None,
                    matmul_dtype=jnp.bfloat16, x_stream_dtype=None,
                    precision=None, force_pallas=False):
    """Highway forward: y = relu(x@W_H^T+b_H)*g + x*(1-g), g = sigmoid(x@W_T^T+b_T).

    x              : (B, D)
    w_h, w_t       : (D, D) torch nn.Linear layout (out_features, in_features)
    b_h, b_t       : (D,)
    matmul_dtype   : MXU operand dtype. Default bf16 (native MXU; 3-6x faster than
                     f32 on v5e/v6e/v7x). Use jnp.float32 (+ precision=HIGHEST) for
                     faithful f32.
    x_stream_dtype : dtype of the streamed x tile (e.g. bf16 halves x DMA/VMEM;
                     the residual then uses that dtype). Default: x.dtype.
    """
    B, D = x.shape
    out_dtype = x.dtype
    matmul_dtype = jnp.dtype(matmul_dtype)
    stream_dtype = (jnp.dtype(x_stream_dtype) if x_stream_dtype is not None
                    else jnp.dtype(x.dtype))

    # Tiny shapes: lane padding + fixed pallas_call overhead cannot beat fused XLA.
    if not force_pallas and (D < 128 or B * D < (64 << 10)):
        return highway_ref(x, w_h, b_h, w_t, b_t)

    itm_x = stream_dtype.itemsize
    itm_w = matmul_dtype.itemsize
    itm_o = jnp.dtype(out_dtype).itemsize

    vmem_cap = _vmem_capacity_bytes()
    n_cores = _num_tensorcores()

    # Lane-dense feature dim; column tiling only when the fused weight is large.
    Dp = _round_up(D, 128)
    if tile_n is None:
        tile_n = _pick_tile_n(Dp, itm_w, vmem_cap)
    tile_n = int(tile_n)
    assert Dp % tile_n == 0 and tile_n % 128 == 0
    n_ft = Dp // tile_n

    # Batch tiling (MXU / sublane aligned; split across cores only when worth it).
    sub = _sublane(stream_dtype, out_dtype)
    x_bytes_total = B * Dp * itm_x
    w_bytes_total = Dp * 2 * Dp * itm_w
    allow_core_split = (n_cores > 1 and B >= 2 * sub
                        and (B >= 512 or x_bytes_total >= w_bytes_total))
    if tile_b is None:
        tile_b = _pick_tile_b(B, sub, allow_core_split)
    tile_b = _round_up(int(tile_b), sub)
    Bp = _round_up(B, tile_b)
    n_bt = Bp // tile_b

    # Zero-pad x (exact: padded rows/cols produce zeros that are sliced off).
    if (Bp, Dp) != (B, D) or stream_dtype != x.dtype:
        x_p = jnp.zeros((Bp, Dp), stream_dtype).at[:B, :D].set(x.astype(stream_dtype))
    else:
        x_p = x

    # Fused weight/bias: column block j holds [W_H^T cols of tile j | W_T^T cols of tile j].
    wh = jnp.zeros((Dp, Dp), matmul_dtype).at[:D, :D].set(w_h.T.astype(matmul_dtype))
    wt = jnp.zeros((Dp, Dp), matmul_dtype).at[:D, :D].set(w_t.T.astype(matmul_dtype))
    w_cat = jnp.stack([wh.reshape(Dp, n_ft, tile_n),
                       wt.reshape(Dp, n_ft, tile_n)], axis=2).reshape(Dp, 2 * Dp)
    bh = jnp.zeros((Dp,), jnp.float32).at[:D].set(b_h.astype(jnp.float32))
    bt = jnp.zeros((Dp,), jnp.float32).at[:D].set(b_t.astype(jnp.float32))
    b_cat = jnp.stack([bh.reshape(n_ft, tile_n),
                       bt.reshape(n_ft, tile_n)], axis=1).reshape(1, 2 * Dp)

    # Megacore: don't duplicate a dominant weight fetch across both cores when the
    # batch is too small to amortize it.
    batch_sem = ("parallel" if (n_cores == 1 or n_bt >= 4
                                or x_bytes_total >= w_bytes_total) else "arbitrary")

    # VMEM budget: double-buffered x/out tiles, weight/bias single-buffered when
    # resident, f32 intermediates; modest 1.25x margin; per-generation cap.
    w_bufs = 1 if n_ft == 1 else 2
    vmem_est = (2 * tile_b * Dp * itm_x            # x tiles
                + 2 * tile_b * tile_n * itm_o      # out tiles
                + w_bufs * Dp * 2 * tile_n * itm_w  # fused weight block(s)
                + w_bufs * 2 * tile_n * 4          # fused bias block(s)
                + 3 * tile_b * 2 * tile_n * 4)     # f32 acc / h / gate temporaries
    vmem_limit = int(min(max(int(1.25 * vmem_est), 16 << 20), int(0.85 * vmem_cap)))

    cost = pl.CostEstimate(
        flops=int(2 * Bp * Dp * 2 * Dp),
        transcendentals=int(Bp * Dp),
        bytes_accessed=int(Bp * Dp * itm_x
                           + (n_bt if n_ft > 1 else 1) * Dp * 2 * Dp * itm_w
                           + 2 * Dp * 4
                           + Bp * Dp * itm_o))

    kernel = functools.partial(highway_kernel, precision=precision)

    def run(single_buffer_resident):
        resident_kw = ({"pipeline_mode": pl.Buffered(1)}
                       if single_buffer_resident else {})
        return pl.pallas_call(
            kernel,
            out_shape=jax.ShapeDtypeStruct((Bp, Dp), out_dtype),
            grid_spec=pl.GridSpec(
                grid=(n_bt, n_ft),
                in_specs=[
                    pl.BlockSpec((tile_b, Dp), lambda i, j: (i, 0)),          # x
                    pl.BlockSpec((Dp, 2 * tile_n), lambda i, j: (0, j),       # W
                                 **resident_kw),
                    pl.BlockSpec((1, 2 * tile_n), lambda i, j: (0, j),        # b
                                 **resident_kw),
                ],
                out_specs=pl.BlockSpec((tile_b, tile_n), lambda i, j: (i, j)),
            ),
            compiler_params=pltpu.CompilerParams(
                dimension_semantics=(batch_sem, "arbitrary"),
                vmem_limit_bytes=vmem_limit,
            ),
            cost_estimate=cost,
        )(x_p, w_cat, b_cat)

    if n_ft == 1:
        # Resident weight/bias (constant index_map): single-buffer them.
        try:
            y_p = run(single_buffer_resident=True)
        except Exception:
            # TODO(synk): drop fallback once pl.Buffered(1) is guaranteed available.
            y_p = run(single_buffer_resident=False)
    else:
        y_p = run(single_buffer_resident=False)

    return y_p[:B, :D]


if __name__ == "__main__":
    key = jax.random.PRNGKey(0)

    def make_params(k, B, D):
        kx, kwh, kbh, kwt, kbt = jax.random.split(k, 5)
        # Deterministic init mimicking torch.nn.Linear default: U(-1/sqrt(D), 1/sqrt(D))
        bound = 1.0 / jnp.sqrt(jnp.float32(D))
        x = jax.random.normal(kx, (B, D), dtype=jnp.float32)
        w_h = jax.random.uniform(kwh, (D, D), jnp.float32, -bound, bound)  # (out, in)
        b_h = jax.random.uniform(kbh, (D,), jnp.float32, -bound, bound)
        w_t = jax.random.uniform(kwt, (D, D), jnp.float32, -bound, bound)  # (out, in)
        b_t = jax.random.uniform(kbt, (D,), jnp.float32, -bound, bound)
        return x, w_h, b_h, w_t, b_t

    k1, k2 = jax.random.split(key)

    # --- Spec-sized case: batch=16, x_size=32 ---------------------------------
    x, w_h, b_h, w_t, b_t = make_params(k1, 16, 32)
    y_ref = highway_ref(x, w_h, b_h, w_t, b_t)

    # Default dispatch: tiny shape -> plain XLA fallback.
    y0 = jax.block_until_ready(highway_forward(x, w_h, b_h, w_t, b_t))
    assert y0.shape == (16, 32)
    assert jnp.allclose(y0, y_ref, atol=1e-6, rtol=1e-6), "XLA fallback mismatch"

    # Forced Pallas, f32 MXU path (numerically faithful to the PyTorch module).
    y1 = jax.block_until_ready(
        highway_forward(x, w_h, b_h, w_t, b_t,
                        matmul_dtype=jnp.float32, force_pallas=True))
    assert y1.shape == (16, 32)
    assert jnp.allclose(y1, y_ref, atol=1e-5, rtol=1e-5), "f32 mismatch vs reference"

    # Forced Pallas, default bf16 MXU path + bf16-streamed x (fast path).
    y2 = jax.block_until_ready(
        highway_forward(x, w_h, b_h, w_t, b_t,
                        x_stream_dtype=jnp.bfloat16, force_pallas=True))
    assert y2.shape == (16, 32)
    assert jnp.allclose(y2, y_ref, atol=6e-2, rtol=6e-2), "bf16 mismatch vs reference"

    # --- Feature-tiled path (still small): B=64, D=256, tile_n=128 forced -----
    xb, wb_h, bb_h, wb_t, bb_t = make_params(k2, 64, 256)
    yb_ref = highway_ref(xb, wb_h, bb_h, wb_t, bb_t)
    y3 = jax.block_until_ready(
        highway_forward(xb, wb_h, bb_h, wb_t, bb_t,
                        tile_n=128, force_pallas=True))
    assert y3.shape == (64, 256)
    assert jnp.allclose(y3, yb_ref, atol=6e-2, rtol=6e-2), "feature-tiled mismatch"

    print("KERNEL_OK")
</pallas_src>

<mosaic_0001>
module attributes {stable_mosaic.version = 11 : i64} {
  func.func @highway_kernel(%arg0: i32, %arg1: i32, %arg2: memref<16x128xf32, #tpu.memory_space<vmem>>, %arg3: memref<128x256xf32, #tpu.memory_space<vmem>>, %arg4: memref<1x256xf32, #tpu.memory_space<vmem>>, %arg5: memref<16x128xf32, #tpu.memory_space<vmem>>) attributes {dimension_semantics = [#tpu.dimension_semantics<parallel>, #tpu.dimension_semantics<arbitrary>], iteration_bounds = array<i64: 1, 1>, scalar_prefetch = 0 : i64, scratch_operands = 0 : i64, tpu.core_type = #tpu.core_type<tc>, window_params = [{transform_indices = @transform_0, window_bounds = array<i64: 16, 128>}, {pipeline_mode = #tpu.pipeline_mode<synchronous>, transform_indices = @transform_1, window_bounds = array<i64: 128, 256>}, {pipeline_mode = #tpu.pipeline_mode<synchronous>, transform_indices = @transform_2, window_bounds = array<i64: 1, 256>}, {transform_indices = @transform_3, window_bounds = array<i64: 16, 128>}]} {
    %c0 = arith.constant 0 : index
    %c0_0 = arith.constant 0 : index
    %0 = vector.load %arg2[%c0, %c0_0] : memref<16x128xf32, #tpu.memory_space<vmem>>, vector<16x128xf32>
    %c0_1 = arith.constant 0 : index
    %c0_2 = arith.constant 0 : index
    %1 = vector.load %arg3[%c0_1, %c0_2] : memref<128x256xf32, #tpu.memory_space<vmem>>, vector<128x256xf32>
    %cst = arith.constant dense<0.000000e+00> : vector<16x256xf32>
    %2 = tpu.matmul %0, %1, %cst {dimension_numbers = #tpu.dot_dimension_numbers<[1], [0], [0], [1], [0, 0, 1, 1], [], []>} : vector<16x128xf32>, vector<128x256xf32>, vector<16x256xf32> -> vector<16x256xf32>
    %c0_3 = arith.constant 0 : index
    %c0_4 = arith.constant 0 : index
    %3 = vector.load %arg4[%c0_3, %c0_4] : memref<1x256xf32, #tpu.memory_space<vmem>>, vector<1x256xf32>
    %4 = vector.broadcast %3 : vector<1x256xf32> to vector<16x256xf32>
    %5 = arith.addf %2, %4 : vector<16x256xf32>
    %6 = vector.extract_strided_slice %5 {offsets = [0, 0], sizes = [16, 128], strides = [1, 1]} : vector<16x256xf32> to vector<16x128xf32>
    %cst_5 = arith.constant 0.000000e+00 : f32
    %7 = vector.broadcast %cst_5 : f32 to vector<16x128xf32>
    %8 = arith.maximumf %6, %7 : vector<16x128xf32>
    %9 = vector.extract_strided_slice %5 {offsets = [0, 128], sizes = [16, 128], strides = [1, 1]} : vector<16x256xf32> to vector<16x128xf32>
    %cst_6 = arith.constant 5.000000e-01 : f32
    %10 = vector.broadcast %cst_6 : f32 to vector<16x128xf32>
    %11 = arith.mulf %10, %9 : vector<16x128xf32>
    %12 = math.tanh %11 : vector<16x128xf32>
    %cst_7 = arith.constant 1.000000e+00 : f32
    %13 = vector.broadcast %cst_7 : f32 to vector<16x128xf32>
    %14 = arith.addf %12, %13 : vector<16x128xf32>
    %cst_8 = arith.constant 5.000000e-01 : f32
    %15 = vector.broadcast %cst_8 : f32 to vector<16x128xf32>
    %16 = arith.mulf %15, %14 : vector<16x128xf32>
    %17 = arith.subf %8, %0 : vector<16x128xf32>
    %18 = arith.mulf %16, %17 : vector<16x128xf32>
    %19 = arith.addf %0, %18 : vector<16x128xf32>
    %c0_9 = arith.constant 0 : index
    %c0_10 = arith.constant 0 : index
    %20 = vector.load %arg5[%c0_9, %c0_10] : memref<16x128xf32, #tpu.memory_space<vmem>>, vector<16x128xf32>
    tpu.vector_store %arg5[%c0_9, %c0_10], %19 {strides = array<i32>} : memref<16x128xf32, #tpu.memory_space<vmem>>, vector<16x128xf32>,
    return
  }
  func.func @transform_0(%arg0: i32, %arg1: i32) -> (i32, i32) {
    %c0_i32 = arith.constant 0 : i32
    %c0_i32_0 = arith.constant 0 : i32
    return %arg0, %c0_i32 : i32, i32
  }
  func.func @transform_1(%arg0: i32, %arg1: i32) -> (i32, i32) {
    %c0_i32 = arith.constant 0 : i32
    %c0_i32_0 = arith.constant 0 : i32
    return %c0_i32, %arg1 : i32, i32
  }
  func.func @transform_2(%arg0: i32, %arg1: i32) -> (i32, i32) {
    %c0_i32 = arith.constant 0 : i32
    %c0_i32_0 = arith.constant 0 : i32
    return %c0_i32, %arg1 : i32, i32
  }
  func.func @transform_3(%arg0: i32, %arg1: i32) -> (i32, i32) {
    %c0_i32 = arith.constant 0 : i32
    return %arg0, %arg1 : i32, i32
  }
}

module attributes {stable_mosaic.version = 11 : i64} {
  func.func @highway_kernel(%arg0: i32, %arg1: i32, %arg2: memref<16x128xf32, #tpu.memory_space<vmem>>, %arg3: memref<128x256xf32, #tpu.memory_space<vmem>>, %arg4: memref<1x256xf32, #tpu.memory_space<vmem>>, %arg5: memref<16x128xf32, #tpu.memory_space<vmem>>) attributes {dimension_semantics = [#tpu.dimension_semantics<parallel>, #tpu.dimension_semantics<arbitrary>], iteration_bounds = array<i64: 1, 1>, scalar_prefetch = 0 : i64, scratch_operands = 0 : i64, tpu.core_type = #tpu.core_type<tc>, window_params = [{transform_indices = @transform_0, window_bounds = array<i64: 16, 128>}, {transform_indices = @transform_1, window_bounds = array<i64: 128, 256>}, {transform_indices = @transform_2, window_bounds = array<i64: 1, 256>}, {transform_indices = @transform_3, window_bounds = array<i64: 16, 128>}]} {
    %c0 = arith.constant 0 : index
    %c0_0 = arith.constant 0 : index
    %0 = vector.load %arg2[%c0, %c0_0] : memref<16x128xf32, #tpu.memory_space<vmem>>, vector<16x128xf32>
    %c0_1 = arith.constant 0 : index
    %c0_2 = arith.constant 0 : index
    %1 = vector.load %arg3[%c0_1, %c0_2] : memref<128x256xf32, #tpu.memory_space<vmem>>, vector<128x256xf32>
    %cst = arith.constant dense<0.000000e+00> : vector<16x256xf32>
    %2 = tpu.matmul %0, %1, %cst {dimension_numbers = #tpu.dot_dimension_numbers<[1], [0], [0], [1], [0, 0, 1, 1], [], []>} : vector<16x128xf32>, vector<128x256xf32>, vector<16x256xf32> -> vector<16x256xf32>
    %c0_3 = arith.constant 0 : index
    %c0_4 = arith.constant 0 : index
    %3 = vector.load %arg4[%c0_3, %c0_4] : memref<1x256xf32, #tpu.memory_space<vmem>>, vector<1x256xf32>
    %4 = vector.broadcast %3 : vector<1x256xf32> to vector<16x256xf32>
    %5 = arith.addf %2, %4 : vector<16x256xf32>
    %6 = vector.extract_strided_slice %5 {offsets = [0, 0], sizes = [16, 128], strides = [1, 1]} : vector<16x256xf32> to vector<16x128xf32>
    %cst_5 = arith.constant 0.000000e+00 : f32
    %7 = vector.broadcast %cst_5 : f32 to vector<16x128xf32>
    %8 = arith.maximumf %6, %7 : vector<16x128xf32>
    %9 = vector.extract_strided_slice %5 {offsets = [0, 128], sizes = [16, 128], strides = [1, 1]} : vector<16x256xf32> to vector<16x128xf32>
    %cst_6 = arith.constant 5.000000e-01 : f32
    %10 = vector.broadcast %cst_6 : f32 to vector<16x128xf32>
    %11 = arith.mulf %10, %9 : vector<16x128xf32>
    %12 = math.tanh %11 : vector<16x128xf32>
    %cst_7 = arith.constant 1.000000e+00 : f32
    %13 = vector.broadcast %cst_7 : f32 to vector<16x128xf32>
    %14 = arith.addf %12, %13 : vector<16x128xf32>
    %cst_8 = arith.constant 5.000000e-01 : f32
    %15 = vector.broadcast %cst_8 : f32 to vector<16x128xf32>
    %16 = arith.mulf %15, %14 : vector<16x128xf32>
    %17 = arith.subf %8, %0 : vector<16x128xf32>
    %18 = arith.mulf %16, %17 : vector<16x128xf32>
    %19 = arith.addf %0, %18 : vector<16x128xf32>
    %c0_9 = arith.constant 0 : index
    %c0_10 = arith.constant 0 : index
    %20 = vector.load %arg5[%c0_9, %c0_10] : memref<16x128xf32, #tpu.memory_space<vmem>>, vector<16x128xf32>
    tpu.vector_store %arg5[%c0_9, %c0_10], %19 {strides = array<i32>} : memref<16x128xf32, #tpu.memory_space<vmem>>, vector<16x128xf32>,
    return
  }
  func.func @transform_0(%arg0: i32, %arg1: i32) -> (i32, i32) {
    %c0_i32 = arith.constant 0 : i32
    %c0_i32_0 = arith.constant 0 : i32
    return %arg0, %c0_i32 : i32, i32
  }
  func.func @transform_1(%arg0: i32, %arg1: i32) -> (i32, i32) {
    %c0_i32 = arith.constant 0 : i32
    %c0_i32_0 = arith.constant 0 : i32
    return %c0_i32, %arg1 : i32, i32
  }
  func.func @transform_2(%arg0: i32, %arg1: i32) -> (i32, i32) {
    %c0_i32 = arith.constant 0 : i32
    %c0_i32_0 = arith.constant 0 : i32
    return %c0_i32, %arg1 : i32, i32
  }
  func.func @transform_3(%arg0: i32, %arg1: i32) -> (i32, i32) {
    %c0_i32 = arith.constant 0 : i32
    return %arg0, %arg1 : i32, i32
  }
}

</mosaic_0001>

<bundles_post_ra>
// kernel: tpu_custom_call.1
= control target key start
LH: loop header
LB: loop body
LE: loop exit
PB: predicated region body
PF: predicated region fallthrough
CT: control target
= control target key end

     0   :  { %8 = vsyncpa [#allocation3], 0  ;;  %s376_s0 = inlined_call_operand.hbm [shape: f32[16,128], index: 0, kind: input, shape index: {}]   ;;  %s377_s1 = inlined_call_operand.hbm [shape: f32[128,256], index: 1, kind: input, shape index: {}]   ;;  %s378_s2 = inlined_call_operand.hbm [shape: f32[1,256], index: 2, kind: input, shape index: {}]   ;;  %s379_s3 = inlined_call_operand.hbm [shape: f32[16,128], index: 3, kind: output, shape index: {}]  }
   0x1   :  { %9 = vsyncpa [#allocation6], 0  ;;  %s28_s14 = sshll.u32 %s377_s1, 4  ;;  %s29_s14 = int_to_ptr.hbm [resolvable:$true] %s28_s14 }
   0x2   :  { %10 = vsyncpa [#allocation4], 0  ;;  %s330_s15 = smov [#allocation5]   ;;  %s15_s19 = sshll.u32 %s376_s0, 4  ;;  %s16_s19 = int_to_ptr.hbm [resolvable:$true] %s15_s19 }
   0x3   :  { %s30_s16 = sshll.u32 %s330_s15, 4  ;;  %s331_s20 = smov 256   ;;  %s31_s16 = int_to_ptr.vmem [resolvable:$true] %s30_s16 }
   0x4   :  { %s332_s21 = smov 16   ;;  %s333_s22 = smov [#allocation2]  }
   0x5   :  { %36 = dma.hbm_to_vmem [thread:$0]  %s29_s14, 4096, %s31_s16, [#allocation6], %s331_s20, %s331_s20, %s332_s21  }
   0x6   :  { %s17_s23 = sshll.u32 %s333_s22, 4  ;;  %s334_s24 = smov 128   ;;  %s18_s23 = int_to_ptr.vmem [resolvable:$true] %s17_s23 }
   0x7   :  { %s335_s25 = smov 8   ;;  %s42_s27 = sshll.u32 %s378_s2, 4  ;;  %s43_s27 = int_to_ptr.hbm [resolvable:$true] %s42_s27 }
   0x8   :  { %23 = dma.hbm_to_vmem [thread:$0]  %s16_s19, 256, %s18_s23, [#allocation3], %s334_s24, %s334_s24, %s335_s25  }
   0x9   :  { %s336_s28 = smov [#allocation7]  }
   0xa   :  { %s44_s0 = sshll.u32 %s336_s28, 4  ;;  %s45_s0 = int_to_ptr.vmem [resolvable:$true] %s44_s0 }
   0xb   :  { %47 = dma.hbm_to_vmem [thread:$0]  %s43_s27, 32, %s45_s0, [#allocation6]  }
   0xc   :  { %324 = dma.done.wait [#allocation3], 256  }
   0xd   :  { %325 = vsyncadd [#allocation3], 4294967040 }
   0xe   :  { %326 = dma.done.wait [#allocation6], 4128  }
   0xf   :  { %327 = vsyncadd [#allocation6], 4294963168  ;;  %v93_v0 = vld [vmem:[#allocation5 + $0xf8] sm:$0xff]  ;;  %v91_v1 = vld [vmem:[#allocation5 + $0xe8] sm:$0xff]  ;;  %s337_s2 = smov [#allocation8]   ;;  %s170_s5 = sshll.u32 %s379_s3, 4  ;;  %s171_s5 = int_to_ptr.hbm [resolvable:$true] %s170_s5 }
  0x10   :  { %200 = vmatpush.msra.mxu3 %v93_v0  ;;  %123 = vmatpush.msra.mxu1 %v93_v0  ;;  %v92_v2 = vld [vmem:[#allocation5 + $0xf0] sm:$0xff]  ;;  %v89_v3 = vld [vmem:[#allocation5 + $0xd8] sm:$0xff]  ;;  %v90_v4 = vld [vmem:[#allocation5 + $0xe0] sm:$0xff]  ;;  %s168_s29 = sshll.u32 %s337_s2, 4  ;;  %s169_s29 = int_to_ptr.vmem [resolvable:$true] %s168_s29 }
  0x11   :  { %184 = vmatpush.msra.mxu2 %v92_v2  ;;  %100 = vmatpush.msra.mxu0 %v92_v2  ;;  %v88_v5 = vld [vmem:[#allocation5 + $0xd0] sm:$0xff]  ;;  %v87_v6 = vld [vmem:[#allocation5 + $0xc8] sm:$0xff]  ;;  %v86_v7 = vld [vmem:[#allocation5 + $0xc0] sm:$0xff] }
  0x12   :  { %201 = vmatpush.msra.mxu3 %v91_v1  ;;  %124 = vmatpush.msra.mxu1 %v91_v1  ;;  %v85_v8 = vld [vmem:[#allocation5 + $0xb8] sm:$0xff]  ;;  %v84_v9 = vld [vmem:[#allocation5 + $0xb0] sm:$0xff]  ;;  %v83_v10 = vld [vmem:[#allocation5 + $0xa8] sm:$0xff] }
  0x13   :  { %185 = vmatpush.msra.mxu2 %v90_v4  ;;  %101 = vmatpush.msra.mxu0 %v90_v4  ;;  %v82_v11 = vld [vmem:[#allocation5 + $0xa0] sm:$0xff]  ;;  %v81_v12 = vld [vmem:[#allocation5 + $0x98] sm:$0xff]  ;;  %v80_v13 = vld [vmem:[#allocation5 + $0x90] sm:$0xff] }
  0x14   :  { %202 = vmatpush.msra.mxu3 %v89_v3  ;;  %125 = vmatpush.msra.mxu1 %v89_v3  ;;  %v79_v14 = vld [vmem:[#allocation5 + $0x88] sm:$0xff]  ;;  %v78_v15 = vld [vmem:[#allocation5 + $0x80] sm:$0xff]  ;;  %v77_v16 = vld [vmem:[#allocation5 + $0x78] sm:$0xff] }
  0x15   :  { %186 = vmatpush.msra.mxu2 %v88_v5  ;;  %102 = vmatpush.msra.mxu0 %v88_v5  ;;  %v76_v17 = vld [vmem:[#allocation5 + $0x70] sm:$0xff]  ;;  %v75_v18 = vld [vmem:[#allocation5 + $0x68] sm:$0xff]  ;;  %v74_v19 = vld [vmem:[#allocation5 + $0x60] sm:$0xff] }
  0x16   :  { %203 = vmatpush.msra.mxu3 %v87_v6  ;;  %126 = vmatpush.msra.mxu1 %v87_v6  ;;  %v73_v20 = vld [vmem:[#allocation5 + $0x58] sm:$0xff]  ;;  %v72_v21 = vld [vmem:[#allocation5 + $0x50] sm:$0xff]  ;;  %v71_v22 = vld [vmem:[#allocation5 + $0x48] sm:$0xff] }
  0x17   :  { %187 = vmatpush.msra.mxu2 %v86_v7  ;;  %103 = vmatpush.msra.mxu0 %v86_v7  ;;  %v70_v23 = vld [vmem:[#allocation5 + $0x40] sm:$0xff]  ;;  %v69_v24 = vld [vmem:[#allocation5 + $0x38] sm:$0xff]  ;;  %v68_v25 = vld [vmem:[#allocation5 + $0x30] sm:$0xff] }
  0x18   :  { %204 = vmatpush.msra.mxu3 %v85_v8  ;;  %127 = vmatpush.msra.mxu1 %v85_v8  ;;  %v67_v26 = vld [vmem:[#allocation5 + $0x28] sm:$0xff]  ;;  %v66_v27 = vld [vmem:[#allocation5 + $0x20] sm:$0xff]  ;;  %v65_v28 = vld [vmem:[#allocation5 + $0x18] sm:$0xff] }
  0x19   :  { %188 = vmatpush.msra.mxu2 %v84_v9  ;;  %104 = vmatpush.msra.mxu0 %v84_v9  ;;  %v64_v29 = vld [vmem:[#allocation5 + $0x10] sm:$0xff]  ;;  %v63_v30 = vld [vmem:[#allocation5 + $0x8] sm:$0xff]  ;;  %v61_v31 = vld [vmem:[#allocation2 + $0x8] sm:$0xff] }
  0x1a   :  { %205 = vmatpush.msra.mxu3 %v83_v10  ;;  %128 = vmatpush.msra.mxu1 %v83_v10  ;;  %v60_v32 = vld [vmem:[#allocation2] sm:$0xff]  ;;  %v62_v33 = vld [vmem:[#allocation5] sm:$0xff] }
  0x1b   :  { %189 = vmatpush.msra.mxu2 %v82_v11  ;;  %105 = vmatpush.msra.mxu0 %v82_v11  ;;  %v94_v34 = vld [vmem:[#allocation7] sm:$0x3] }
  0x1c   :  { %206 = vmatpush.msra.mxu3 %v81_v12  ;;  %129 = vmatpush.msra.mxu1 %v81_v12  ;;  %v97_v35 = vperm.slane %v94_v34, 1  ;;  %v96_v37 = vperm.slane %v94_v34, 0 }
  0x1d   :  { %190 = vmatpush.msra.mxu2 %v80_v13  ;;  %106 = vmatpush.msra.mxu0 %v80_v13 }
  0x1e   :  { %207 = vmatpush.msra.mxu3 %v79_v14  ;;  %130 = vmatpush.msra.mxu1 %v79_v14 }
  0x1f   :  { %191 = vmatpush.msra.mxu2 %v78_v15  ;;  %107 = vmatpush.msra.mxu0 %v78_v15 }
  0x20   :  { %208 = vmatpush.msra.mxu3 %v77_v16  ;;  %131 = vmatpush.msra.mxu1 %v77_v16 }
  0x21   :  { %192 = vmatpush.msra.mxu2 %v76_v17  ;;  %108 = vmatpush.msra.mxu0 %v76_v17 }
  0x22   :  { %209 = vmatpush.msra.mxu3 %v75_v18  ;;  %132 = vmatpush.msra.mxu1 %v75_v18 }
  0x23   :  { %193 = vmatpush.msra.mxu2 %v74_v19  ;;  %109 = vmatpush.msra.mxu0 %v74_v19 }
  0x24   :  { %210 = vmatpush.msra.mxu3 %v73_v20  ;;  %133 = vmatpush.msra.mxu1 %v73_v20 }
  0x25   :  { %194 = vmatpush.msra.mxu2 %v72_v21  ;;  %110 = vmatpush.msra.mxu0 %v72_v21 }
  0x26   :  { %211 = vmatpush.msra.mxu3 %v71_v22  ;;  %134 = vmatpush.msra.mxu1 %v71_v22 }
  0x27   :  { %195 = vmatpush.msra.mxu2 %v70_v23  ;;  %111 = vmatpush.msra.mxu0 %v70_v23 }
  0x28   :  { %212 = vmatpush.msra.mxu3 %v69_v24  ;;  %135 = vmatpush.msra.mxu1 %v69_v24 }
  0x29   :  { %196 = vmatpush.msra.mxu2 %v68_v25  ;;  %112 = vmatpush.msra.mxu0 %v68_v25 }
  0x2a   :  { %213 = vmatpush.msra.mxu3 %v67_v26  ;;  %136 = vmatpush.msra.mxu1 %v67_v26 }
  0x2b   :  { %197 = vmatpush.msra.mxu2 %v66_v27  ;;  %113 = vmatpush.msra.mxu0 %v66_v27 }
  0x2c   :  { %214 = vmatpush.msra.mxu3 %v65_v28  ;;  %137 = vmatpush.msra.mxu1 %v65_v28 }
  0x2d   :  { %198 = vmatpush.msra.mxu2 %v64_v29  ;;  %114 = vmatpush.msra.mxu0 %v64_v29 }
  0x2e   :  { %215 = vmatpush.msra.mxu3 %v63_v30  ;;  %138 = vmatpush.msra.mxu1 %v63_v30 }
  0x2f   :  { %142 = vmatmul.f32.vlgmr.msra.gmra.mxu3 %v61_v31  ;;  %139 = vmatmul.f32.vlgmr.msra.gmra.mxu1 %v60_v32 }
  0x30   :  { %199 = vmatpush.msra.mxu2 %v62_v33  ;;  %115 = vmatpush.msra.mxu0 %v62_v33 }
  0x31   :  { %119 = vmatmul.f32.vlgmr.msra.gmra.mxu2 %v61_v31  ;;  %116 = vmatmul.f32.vlgmr.msra.gmra.mxu0 %v60_v32 }
  0xac   :  { %v140_v36 = vpop.f32.mrf.mxu1 }
  0xad   :  { %v141_v38 = vadd.f32 %v140_v36, %v97_v35 }
  0xae   :  { %v117_v39 = vpop.f32.mrf.mxu0 }
  0xaf   :  { %v148_v40 = vmul.f32 0.5, %v141_v38  ;;  %v118_v41 = vadd.f32 %v117_v39, %v96_v37 }
  0xb1   :  { %224 = vtanh.f32 %v148_v40  ;;  %v146_v44 = vmax.f32 %v118_v41, 0.0 }
  0xb2   :  { %v143_v42 = vpop.f32.mrf.mxu3 }
  0xb3   :  { %v144_v43 = vadd.f32 %v143_v42, %v97_v35  ;;  %v156_v50 = vsub.f32 %v146_v44, %v60_v32 }
  0xb4   :  { %v120_v45 = vpop.f32.mrf.mxu2 }
  0xb5   :  { %v149_v46 = vmul.f32 0.5, %v144_v43  ;;  %v121_v47 = vadd.f32 %v120_v45, %v96_v37 }
  0xb7   :  { %v225_v48 = vpop.eup %224  ;;  %226 = vtanh.f32 %v149_v46  ;;  %v147_v52 = vmax.f32 %v121_v47, 0.0 }
  0xb8   :  { %v152_v49 = vadd.f32 1.0, %v225_v48 }
  0xb9   :  { %v157_v57 = vsub.f32 %v147_v52, %v61_v31 }
  0xba   :  { %v154_v51 = vmul.f32 0.5, %v152_v49 }
  0xbc   :  { %v158_v53 = vmul.f32 %v156_v50, %v154_v51 }
  0xbd   :  { %v227_v54 = vpop.eup %226 }
  0xbe   :  { %v153_v55 = vadd.f32 1.0, %v227_v54  ;;  %v160_v56 = vadd.f32 %v158_v53, %v60_v32 }
  0xc0   :  { %v155_v58 = vmul.f32 0.5, %v153_v55  ;;  %162 = vst [vmem:[#allocation8] sm:$0xff] %v160_v56 }
  0xc2   :  { %v159_v59 = vmul.f32 %v157_v57, %v155_v58 }
  0xc4   :  { %v161_v60 = vadd.f32 %v159_v59, %v61_v31 }
  0xc6   :  { %163 = vst [vmem:[#allocation8 + $0x8] sm:$0xff] %v161_v60 }
  0xc7   :  { %176 = dma.vmem_to_hbm [thread:$0]  %s169_s29, 256, %s171_s5, [#allocation4], %s334_s24, %s334_s24, %s335_s25  }
  0xc8   :  { %328 = dma.done.wait [#allocation4], 256  }
  0xc9   :  { %329 = vsyncadd [#allocation4], 4294967040 }
  0xca   :  { %181 = vsyncpa [#allocation3], 1 }
  0xcb   :  { %182 = vsyncpa [#allocation6], 1 }
  0xcc   :  { %183 = vsyncpa [#allocation4], 1 }

// kernel: tpu_custom_call.1
= control target key start
LH: loop header
LB: loop body
LE: loop exit
PB: predicated region body
PF: predicated region fallthrough
CT: control target
= control target key end

     0   :  { %8 = vsyncpa [#allocation3], 0  ;;  %s376_s0 = inlined_call_operand.hbm [shape: f32[16,128], index: 0, kind: input, shape index: {}]   ;;  %s377_s1 = inlined_call_operand.hbm [shape: f32[128,256], index: 1, kind: input, shape index: {}]   ;;  %s378_s2 = inlined_call_operand.hbm [shape: f32[1,256], index: 2, kind: input, shape index: {}]   ;;  %s379_s3 = inlined_call_operand.hbm [shape: f32[16,128], index: 3, kind: output, shape index: {}]  }
   0x1   :  { %9 = vsyncpa [#allocation6], 0  ;;  %s28_s14 = sshll.u32 %s377_s1, 4  ;;  %s29_s14 = int_to_ptr.hbm [resolvable:$true] %s28_s14 }
   0x2   :  { %10 = vsyncpa [#allocation4], 0  ;;  %s330_s15 = smov [#allocation5]   ;;  %s15_s19 = sshll.u32 %s376_s0, 4  ;;  %s16_s19 = int_to_ptr.hbm [resolvable:$true] %s15_s19 }
   0x3   :  { %s30_s16 = sshll.u32 %s330_s15, 4  ;;  %s331_s20 = smov 256   ;;  %s31_s16 = int_to_ptr.vmem [resolvable:$true] %s30_s16 }
   0x4   :  { %s332_s21 = smov 16   ;;  %s333_s22 = smov [#allocation2]  }
   0x5   :  { %36 = dma.hbm_to_vmem [thread:$0]  %s29_s14, 4096, %s31_s16, [#allocation6], %s331_s20, %s331_s20, %s332_s21  }
   0x6   :  { %s17_s23 = sshll.u32 %s333_s22, 4  ;;  %s334_s24 = smov 128   ;;  %s18_s23 = int_to_ptr.vmem [resolvable:$true] %s17_s23 }
   0x7   :  { %s335_s25 = smov 8   ;;  %s42_s27 = sshll.u32 %s378_s2, 4  ;;  %s43_s27 = int_to_ptr.hbm [resolvable:$true] %s42_s27 }
   0x8   :  { %23 = dma.hbm_to_vmem [thread:$0]  %s16_s19, 256, %s18_s23, [#allocation3], %s334_s24, %s334_s24, %s335_s25  }
   0x9   :  { %s336_s28 = smov [#allocation7]  }
   0xa   :  { %s44_s0 = sshll.u32 %s336_s28, 4  ;;  %s45_s0 = int_to_ptr.vmem [resolvable:$true] %s44_s0 }
   0xb   :  { %47 = dma.hbm_to_vmem [thread:$0]  %s43_s27, 32, %s45_s0, [#allocation6]  }
   0xc   :  { %324 = dma.done.wait [#allocation3], 256  }
   0xd   :  { %325 = vsyncadd [#allocation3], 4294967040 }
   0xe   :  { %326 = dma.done.wait [#allocation6], 4128  }
   0xf   :  { %327 = vsyncadd [#allocation6], 4294963168  ;;  %v93_v0 = vld [vmem:[#allocation5 + $0xf8] sm:$0xff]  ;;  %v91_v1 = vld [vmem:[#allocation5 + $0xe8] sm:$0xff]  ;;  %s337_s2 = smov [#allocation8]   ;;  %s170_s5 = sshll.u32 %s379_s3, 4  ;;  %s171_s5 = int_to_ptr.hbm [resolvable:$true] %s170_s5 }
  0x10   :  { %200 = vmatpush.msra.mxu3 %v93_v0  ;;  %123 = vmatpush.msra.mxu1 %v93_v0  ;;  %v92_v2 = vld [vmem:[#allocation5 + $0xf0] sm:$0xff]  ;;  %v89_v3 = vld [vmem:[#allocation5 + $0xd8] sm:$0xff]  ;;  %v90_v4 = vld [vmem:[#allocation5 + $0xe0] sm:$0xff]  ;;  %s168_s29 = sshll.u32 %s337_s2, 4  ;;  %s169_s29 = int_to_ptr.vmem [resolvable:$true] %s168_s29 }
  0x11   :  { %184 = vmatpush.msra.mxu2 %v92_v2  ;;  %100 = vmatpush.msra.mxu0 %v92_v2  ;;  %v88_v5 = vld [vmem:[#allocation5 + $0xd0] sm:$0xff]  ;;  %v87_v6 = vld [vmem:[#allocation5 + $0xc8] sm:$0xff]  ;;  %v86_v7 = vld [vmem:[#allocation5 + $0xc0] sm:$0xff] }
  0x12   :  { %201 = vmatpush.msra.mxu3 %v91_v1  ;;  %124 = vmatpush.msra.mxu1 %v91_v1  ;;  %v85_v8 = vld [vmem:[#allocation5 + $0xb8] sm:$0xff]  ;;  %v84_v9 = vld [vmem:[#allocation5 + $0xb0] sm:$0xff]  ;;  %v83_v10 = vld [vmem:[#allocation5 + $0xa8] sm:$0xff] }
  0x13   :  { %185 = vmatpush.msra.mxu2 %v90_v4  ;;  %101 = vmatpush.msra.mxu0 %v90_v4  ;;  %v82_v11 = vld [vmem:[#allocation5 + $0xa0] sm:$0xff]  ;;  %v81_v12 = vld [vmem:[#allocation5 + $0x98] sm:$0xff]  ;;  %v80_v13 = vld [vmem:[#allocation5 + $0x90] sm:$0xff] }
  0x14   :  { %202 = vmatpush.msra.mxu3 %v89_v3  ;;  %125 = vmatpush.msra.mxu1 %v89_v3  ;;  %v79_v14 = vld [vmem:[#allocation5 + $0x88] sm:$0xff]  ;;  %v78_v15 = vld [vmem:[#allocation5 + $0x80] sm:$0xff]  ;;  %v77_v16 = vld [vmem:[#allocation5 + $0x78] sm:$0xff] }
  0x15   :  { %186 = vmatpush.msra.mxu2 %v88_v5  ;;  %102 = vmatpush.msra.mxu0 %v88_v5  ;;  %v76_v17 = vld [vmem:[#allocation5 + $0x70] sm:$0xff]  ;;  %v75_v18 = vld [vmem:[#allocation5 + $0x68] sm:$0xff]  ;;  %v74_v19 = vld [vmem:[#allocation5 + $0x60] sm:$0xff] }
  0x16   :  { %203 = vmatpush.msra.mxu3 %v87_v6  ;;  %126 = vmatpush.msra.mxu1 %v87_v6  ;;  %v73_v20 = vld [vmem:[#allocation5 + $0x58] sm:$0xff]  ;;  %v72_v21 = vld [vmem:[#allocation5 + $0x50] sm:$0xff]  ;;  %v71_v22 = vld [vmem:[#allocation5 + $0x48] sm:$0xff] }
  0x17   :  { %187 = vmatpush.msra.mxu2 %v86_v7  ;;  %103 = vmatpush.msra.mxu0 %v86_v7  ;;  %v70_v23 = vld [vmem:[#allocation5 + $0x40] sm:$0xff]  ;;  %v69_v24 = vld [vmem:[#allocation5 + $0x38] sm:$0xff]  ;;  %v68_v25 = vld [vmem:[#allocation5 + $0x30] sm:$0xff] }
  0x18   :  { %204 = vmatpush.msra.mxu3 %v85_v8  ;;  %127 = vmatpush.msra.mxu1 %v85_v8  ;;  %v67_v26 = vld [vmem:[#allocation5 + $0x28] sm:$0xff]  ;;  %v66_v27 = vld [vmem:[#allocation5 + $0x20] sm:$0xff]  ;;  %v65_v28 = vld [vmem:[#allocation5 + $0x18] sm:$0xff] }
  0x19   :  { %188 = vmatpush.msra.mxu2 %v84_v9  ;;  %104 = vmatpush.msra.mxu0 %v84_v9  ;;  %v64_v29 = vld [vmem:[#allocation5 + $0x10] sm:$0xff]  ;;  %v63_v30 = vld [vmem:[#allocation5 + $0x8] sm:$0xff]  ;;  %v61_v31 = vld [vmem:[#allocation2 + $0x8] sm:$0xff] }
  0x1a   :  { %205 = vmatpush.msra.mxu3 %v83_v10  ;;  %128 = vmatpush.msra.mxu1 %v83_v10  ;;  %v60_v32 = vld [vmem:[#allocation2] sm:$0xff]  ;;  %v62_v33 = vld [vmem:[#allocation5] sm:$0xff] }
  0x1b   :  { %189 = vmatpush.msra.mxu2 %v82_v11  ;;  %105 = vmatpush.msra.mxu0 %v82_v11  ;;  %v94_v34 = vld [vmem:[#allocation7] sm:$0x3] }
  0x1c   :  { %206 = vmatpush.msra.mxu3 %v81_v12  ;;  %129 = vmatpush.msra.mxu1 %v81_v12  ;;  %v97_v35 = vperm.slane %v94_v34, 1  ;;  %v96_v37 = vperm.slane %v94_v34, 0 }
  0x1d   :  { %190 = vmatpush.msra.mxu2 %v80_v13  ;;  %106 = vmatpush.msra.mxu0 %v80_v13 }
  0x1e   :  { %207 = vmatpush.msra.mxu3 %v79_v14  ;;  %130 = vmatpush.msra.mxu1 %v79_v14 }
  0x1f   :  { %191 = vmatpush.msra.mxu2 %v78_v15  ;;  %107 = vmatpush.msra.mxu0 %v78_v15 }
  0x20   :  { %208 = vmatpush.msra.mxu3 %v77_v16  ;;  %131 = vmatpush.msra.mxu1 %v77_v16 }
  0x21   :  { %192 = vmatpush.msra.mxu2 %v76_v17  ;;  %108 = vmatpush.msra.mxu0 %v76_v17 }
  0x22   :  { %209 = vmatpush.msra.mxu3 %v75_v18  ;;  %132 = vmatpush.msra.mxu1 %v75_v18 }
  0x23   :  { %193 = vmatpush.msra.mxu2 %v74_v19  ;;  %109 = vmatpush.msra.mxu0 %v74_v19 }
  0x24   :  { %210 = vmatpush.msra.mxu3 %v73_v20  ;;  %133 = vmatpush.msra.mxu1 %v73_v20 }
  0x25   :  { %194 = vmatpush.msra.mxu2 %v72_v21  ;;  %110 = vmatpush.msra.mxu0 %v72_v21 }
  0x26   :  { %211 = vmatpush.msra.mxu3 %v71_v22  ;;  %134 = vmatpush.msra.mxu1 %v71_v22 }
  0x27   :  { %195 = vmatpush.msra.mxu2 %v70_v23  ;;  %111 = vmatpush.msra.mxu0 %v70_v23 }
  0x28   :  { %212 = vmatpush.msra.mxu3 %v69_v24  ;;  %135 = vmatpush.msra.mxu1 %v69_v24 }
  0x29   :  { %196 = vmatpush.msra.mxu2 %v68_v25  ;;  %112 = vmatpush.msra.mxu0 %v68_v25 }
  0x2a   :  { %213 = vmatpush.msra.mxu3 %v67_v26  ;;  %136 = vmatpush.msra.mxu1 %v67_v26 }
  0x2b   :  { %197 = vmatpush.msra.mxu2 %v66_v27  ;;  %113 = vmatpush.msra.mxu0 %v66_v27 }
  0x2c   :  { %214 = vmatpush.msra.mxu3 %v65_v28  ;;  %137 = vmatpush.msra.mxu1 %v65_v28 }
  0x2d   :  { %198 = vmatpush.msra.mxu2 %v64_v29  ;;  %114 = vmatpush.msra.mxu0 %v64_v29 }
  0x2e   :  { %215 = vmatpush.msra.mxu3 %v63_v30  ;;  %138 = vmatpush.msra.mxu1 %v63_v30 }
  0x2f   :  { %142 = vmatmul.f32.vlgmr.msra.gmra.mxu3 %v61_v31  ;;  %139 = vmatmul.f32.vlgmr.msra.gmra.mxu1 %v60_v32 }
  0x30   :  { %199 = vmatpush.msra.mxu2 %v62_v33  ;;  %115 = vmatpush.msra.mxu0 %v62_v33 }
  0x31   :  { %119 = vmatmul.f32.vlgmr.msra.gmra.mxu2 %v61_v31  ;;  %116 = vmatmul.f32.vlgmr.msra.gmra.mxu0 %v60_v32 }
  0xac   :  { %v140_v36 = vpop.f32.mrf.mxu1 }
  0xad   :  { %v141_v38 = vadd.f32 %v140_v36, %v97_v35 }
  0xae   :  { %v117_v39 = vpop.f32.mrf.mxu0 }
  0xaf   :  { %v148_v40 = vmul.f32 0.5, %v141_v38  ;;  %v118_v41 = vadd.f32 %v117_v39, %v96_v37 }
  0xb1   :  { %224 = vtanh.f32 %v148_v40  ;;  %v146_v44 = vmax.f32 %v118_v41, 0.0 }
  0xb2   :  { %v143_v42 = vpop.f32.mrf.mxu3 }
  0xb3   :  { %v144_v43 = vadd.f32 %v143_v42, %v97_v35  ;;  %v156_v50 = vsub.f32 %v146_v44, %v60_v32 }
  0xb4   :  { %v120_v45 = vpop.f32.mrf.mxu2 }
  0xb5   :  { %v149_v46 = vmul.f32 0.5, %v144_v43  ;;  %v121_v47 = vadd.f32 %v120_v45, %v96_v37 }
  0xb7   :  { %v225_v48 = vpop.eup %224  ;;  %226 = vtanh.f32 %v149_v46  ;;  %v147_v52 = vmax.f32 %v121_v47, 0.0 }
  0xb8   :  { %v152_v49 = vadd.f32 1.0, %v225_v48 }
  0xb9   :  { %v157_v57 = vsub.f32 %v147_v52, %v61_v31 }
  0xba   :  { %v154_v51 = vmul.f32 0.5, %v152_v49 }
  0xbc   :  { %v158_v53 = vmul.f32 %v156_v50, %v154_v51 }
  0xbd   :  { %v227_v54 = vpop.eup %226 }
  0xbe   :  { %v153_v55 = vadd.f32 1.0, %v227_v54  ;;  %v160_v56 = vadd.f32 %v158_v53, %v60_v32 }
  0xc0   :  { %v155_v58 = vmul.f32 0.5, %v153_v55  ;;  %162 = vst [vmem:[#allocation8] sm:$0xff] %v160_v56 }
  0xc2   :  { %v159_v59 = vmul.f32 %v157_v57, %v155_v58 }
  0xc4   :  { %v161_v60 = vadd.f32 %v159_v59, %v61_v31 }
  0xc6   :  { %163 = vst [vmem:[#allocation8 + $0x8] sm:$0xff] %v161_v60 }
  0xc7   :  { %176 = dma.vmem_to_hbm [thread:$0]  %s169_s29, 256, %s171_s5, [#allocation4], %s334_s24, %s334_s24, %s335_s25  }
  0xc8   :  { %328 = dma.done.wait [#allocation4], 256  }
  0xc9   :  { %329 = vsyncadd [#allocation4], 4294967040 }
  0xca   :  { %181 = vsyncpa [#allocation3], 1 }
  0xcb   :  { %182 = vsyncpa [#allocation6], 1 }
  0xcc   :  { %183 = vsyncpa [#allocation4], 1 }

</bundles_post_ra>
